<compile_context>
chip_gen: v7x
topology: tpu7x:2x2x1
jax: 0.10.0
libtpu: 0.0.40
codegen_flags: <defaults>
</compile_context>

<pallas_src>
import jax
import jax.numpy as jnp
from jax.experimental import pallas as pl
from jax.experimental.pallas import tpu as pltpu

BN_EPS = 1e-5
_LANE = 128
_OUT_TILE = 512  # output-tile width for large num_point (multiple of 128)


def _round_up(x, m):
    return (x + m - 1) // m * m


def _part_decoder_kernel(x_ref,
                         w1_ref, g1_ref, be1_ref,
                         w2_ref, g2_ref, be2_ref,
                         w3_ref, b3_ref,
                         out_ref,
                         h_ref):
    """Grid: (num_out_tiles,).

    Step 0 computes the hidden activation h = relu(bn2(relu(bn1(x@W1))@W2))
    into VMEM scratch (bf16).  Every step then produces one lane-dense
    (B, TN) tile of mlp3: out = h @ W3[:, tile] + b3[tile].
    """

    @pl.when(pl.program_id(0) == 0)
    def _compute_hidden():
        B = x_ref.shape[0]
        inv_b = 1.0 / B

        def bn_relu(h, g_ref, be_ref):
            # one-pass batch stats (biased variance), folded into one affine
            s = jnp.sum(h, axis=0, keepdims=True)
            sq = jnp.sum(h * h, axis=0, keepdims=True)
            mu = s * inv_b
            var = jnp.maximum(sq * inv_b - mu * mu, 0.0)      # guard cancellation
            scale = g_ref[...] * jax.lax.rsqrt(var + BN_EPS)  # rsqrt -> EUP
            shift = be_ref[...] - mu * scale
            return jnp.maximum(h * scale + shift, 0.0)

        # mlp1 -> bn1 -> relu  (b1 dropped: constant bias cancels in batch-stat BN)
        h = jnp.dot(x_ref[...], w1_ref[...], preferred_element_type=jnp.float32)
        h = bn_relu(h, g1_ref, be1_ref)

        # mlp2 -> bn2 -> relu  (b2 dropped, same reason)
        h = jnp.dot(h.astype(jnp.bfloat16), w2_ref[...],
                    preferred_element_type=jnp.float32)
        h = bn_relu(h, g2_ref, be2_ref)

        h_ref[...] = h.astype(jnp.bfloat16)

    # mlp3 on the current lane-dense output tile
    out = jnp.dot(h_ref[...], w3_ref[...], preferred_element_type=jnp.float32)
    out_ref[...] = (out + b3_ref[...]).astype(out_ref.dtype)


def part_decoder_forward(net, params, num_point):
    """net: (B, feat_len) float32. Returns (B, num_point, 3) float32."""
    B, F = net.shape
    out_dim = num_point * 3

    Fp = _round_up(F, _LANE)
    if out_dim <= _OUT_TILE:
        out_pad = _round_up(out_dim, _LANE)
        tn = out_pad
    else:
        out_pad = _round_up(out_dim, _OUT_TILE)
        tn = _OUT_TILE
    n_tiles = out_pad // tn

    def pad2(a, r, c):
        return jnp.pad(a, ((0, r - a.shape[0]), (0, c - a.shape[1])))

    # pad (+ bf16-cast matmul operands) in the wrapper; zero padding is exact:
    # padded hidden lanes stay identically zero through matmul/BN/ReLU.
    x = pad2(net, B, Fp).astype(jnp.bfloat16)
    w1 = pad2(params["w1"], Fp, Fp).astype(jnp.bfloat16)
    w2 = pad2(params["w2"], Fp, Fp).astype(jnp.bfloat16)
    w3 = pad2(params["w3"], Fp, out_pad).astype(jnp.bfloat16)
    g1 = pad2(params["g1"], 1, Fp)
    be1 = pad2(params["be1"], 1, Fp)
    g2 = pad2(params["g2"], 1, Fp)
    be2 = pad2(params["be2"], 1, Fp)
    b3 = pad2(params["b3"], 1, out_pad)

    def const(shape):
        return pl.BlockSpec(shape, lambda j: (0,) * len(shape))

    # VMEM footprint estimate -> sane limit (don't blindly request 64 MiB; that
    # is the entire physical VMEM of a v7x TensorCore).
    est = (B * Fp * 2                  # x (bf16)
           + 2 * Fp * Fp * 2           # w1, w2 (bf16)
           + 4 * Fp * 4                # bn gamma/beta (f32)
           + 2 * Fp * tn * 2           # w3 tile, double buffered (bf16)
           + 2 * tn * 4                # b3 tile, double buffered
           + 2 * B * tn * 4            # out tile, double buffered
           + B * Fp * 2)               # h scratch (bf16)
    vmem_limit = min(max(2 * est + (4 << 20), 16 << 20), 48 << 20)

    out = pl.pallas_call(
        _part_decoder_kernel,
        out_shape=jax.ShapeDtypeStruct((B, out_pad), jnp.float32),
        grid_spec=pltpu.PrefetchScalarGridSpec(
            num_scalar_prefetch=0,
            grid=(n_tiles,),
            in_specs=[
                const((B, Fp)),                                # x
                const((Fp, Fp)), const((1, Fp)), const((1, Fp)),   # w1, g1, be1
                const((Fp, Fp)), const((1, Fp)), const((1, Fp)),   # w2, g2, be2
                pl.BlockSpec((Fp, tn), lambda j: (0, j)),      # w3 tile
                pl.BlockSpec((1, tn), lambda j: (0, j)),       # b3 tile
            ],
            out_specs=pl.BlockSpec((B, tn), lambda j: (0, j)),
            scratch_shapes=[pltpu.VMEM((B, Fp), jnp.bfloat16)],
        ),
        compiler_params=pltpu.CompilerParams(
            # "arbitrary": out-tile axis reuses the step-0 h scratch, so it must
            # run sequentially on one core (megacore would need h recompute).
            dimension_semantics=("arbitrary",),
            vmem_limit_bytes=vmem_limit,
        ),
    )(x, w1, g1, be1, w2, g2, be2, w3, b3)

    return out[:, :out_dim].reshape(-1, num_point, 3)


def init_params(key, feat_len, num_point):
    """PyTorch-style uniform init. Weights stored as (in, out) so x @ W + b."""
    ks = jax.random.split(key, 6)
    out_dim = num_point * 3

    def linear(kw, kb, fan_in, fan_out):
        bound = 1.0 / (fan_in ** 0.5)
        w = jax.random.uniform(kw, (fan_in, fan_out), jnp.float32, -bound, bound)
        b = jax.random.uniform(kb, (1, fan_out), jnp.float32, -bound, bound)
        return w, b

    w1, b1 = linear(ks[0], ks[1], feat_len, feat_len)
    w2, b2 = linear(ks[2], ks[3], feat_len, feat_len)
    w3, b3 = linear(ks[4], ks[5], feat_len, out_dim)

    ones = jnp.ones((1, feat_len), jnp.float32)
    zeros = jnp.zeros((1, feat_len), jnp.float32)
    return {
        "w1": w1, "b1": b1, "g1": ones, "be1": zeros,
        "w2": w2, "b2": b2, "g2": ones, "be2": zeros,
        "w3": w3, "b3": b3,
    }


def _reference_forward(net, params, num_point):
    """Pure-JAX f32 reference of the PyTorch module (biases included)."""
    def bn(x, g, b):
        mu = jnp.mean(x, axis=0, keepdims=True)
        var = jnp.mean((x - mu) ** 2, axis=0, keepdims=True)
        return (x - mu) / jnp.sqrt(var + BN_EPS) * g + b

    h = jnp.maximum(bn(net @ params["w1"] + params["b1"], params["g1"], params["be1"]), 0.0)
    h = jnp.maximum(bn(h @ params["w2"] + params["b2"], params["g2"], params["be2"]), 0.0)
    out = h @ params["w3"] + params["b3"]
    return out.reshape(-1, num_point, 3)


if __name__ == "__main__":
    feat_len = 32
    num_point = 8
    batch = 8

    key = jax.random.PRNGKey(0)
    k_x, k_p = jax.random.split(key)
    net = jax.random.normal(k_x, (batch, feat_len), jnp.float32)
    params = init_params(k_p, feat_len, num_point)

    pred = part_decoder_forward(net, params, num_point)
    jax.block_until_ready(pred)

    ref = _reference_forward(net, params, num_point)
    assert pred.shape == (batch, num_point, 3)
    # bf16 matmul inputs (f32 accumulation) -> tolerance loosened accordingly.
    assert jnp.allclose(pred, ref, atol=3e-2, rtol=3e-2)

    # TODO(synk): ChamferDistance-based .loss() is a separate nearest-neighbor
    # kernel and is not part of forward(); not implemented here.
    print("KERNEL_OK")
</pallas_src>

<mosaic_0001>
module attributes {stable_mosaic.version = 11 : i64} {
  func.func @_part_decoder_kernel(%arg0: i32, %arg1: memref<8x128xbf16, #tpu.memory_space<vmem>>, %arg2: memref<128x128xbf16, #tpu.memory_space<vmem>>, %arg3: memref<1x128xf32, #tpu.memory_space<vmem>>, %arg4: memref<1x128xf32, #tpu.memory_space<vmem>>, %arg5: memref<128x128xbf16, #tpu.memory_space<vmem>>, %arg6: memref<1x128xf32, #tpu.memory_space<vmem>>, %arg7: memref<1x128xf32, #tpu.memory_space<vmem>>, %arg8: memref<128x128xbf16, #tpu.memory_space<vmem>>, %arg9: memref<1x128xf32, #tpu.memory_space<vmem>>, %arg10: memref<8x128xf32, #tpu.memory_space<vmem>>, %arg11: memref<8x128xbf16, #tpu.memory_space<vmem>>) attributes {dimension_semantics = [#tpu.dimension_semantics<arbitrary>], iteration_bounds = array<i64: 1>, scalar_prefetch = 0 : i64, scratch_operands = 1 : i64, tpu.core_type = #tpu.core_type<tc>, window_params = [{pipeline_mode = #tpu.pipeline_mode<synchronous>, transform_indices = @transform_0, window_bounds = array<i64: 8, 128>}, {pipeline_mode = #tpu.pipeline_mode<synchronous>, transform_indices = @transform_1, window_bounds = array<i64: 128, 128>}, {pipeline_mode = #tpu.pipeline_mode<synchronous>, transform_indices = @transform_2, window_bounds = array<i64: 1, 128>}, {pipeline_mode = #tpu.pipeline_mode<synchronous>, transform_indices = @transform_3, window_bounds = array<i64: 1, 128>}, {pipeline_mode = #tpu.pipeline_mode<synchronous>, transform_indices = @transform_4, window_bounds = array<i64: 128, 128>}, {pipeline_mode = #tpu.pipeline_mode<synchronous>, transform_indices = @transform_5, window_bounds = array<i64: 1, 128>}, {pipeline_mode = #tpu.pipeline_mode<synchronous>, transform_indices = @transform_6, window_bounds = array<i64: 1, 128>}, {transform_indices = @transform_7, window_bounds = array<i64: 128, 128>}, {transform_indices = @transform_8, window_bounds = array<i64: 1, 128>}, {transform_indices = @transform_9, window_bounds = array<i64: 8, 128>}]} {
    %c0_i32 = arith.constant 0 : i32
    %0 = arith.cmpi eq, %arg0, %c0_i32 : i32
    %1 = arith.extui %0 : i1 to i32
    %c0_i32_0 = arith.constant 0 : i32
    %2 = arith.cmpi ne, %1, %c0_i32_0 : i32
    scf.if %2 {
      %c0_8 = arith.constant 0 : index
      %c0_9 = arith.constant 0 : index
      %10 = vector.load %arg1[%c0_8, %c0_9] : memref<8x128xbf16, #tpu.memory_space<vmem>>, vector<8x128xbf16>
      %c0_10 = arith.constant 0 : index
      %c0_11 = arith.constant 0 : index
      %11 = vector.load %arg2[%c0_10, %c0_11] : memref<128x128xbf16, #tpu.memory_space<vmem>>, vector<128x128xbf16>
      %cst_12 = arith.constant dense<0.000000e+00> : vector<8x128xf32>
      %12 = tpu.matmul %10, %11, %cst_12 {dimension_numbers = #tpu.dot_dimension_numbers<[1], [0], [0], [1], [0, 0, 1, 1], [], []>} : vector<8x128xbf16>, vector<128x128xbf16>, vector<8x128xf32> -> vector<8x128xf32>
      %cst_13 = arith.constant dense<0.000000e+00> : vector<128xf32>
      %13 = vector.multi_reduction <add>, %12, %cst_13 [0] : vector<8x128xf32> to vector<128xf32>
      %14 = vector.shape_cast %13 : vector<128xf32> to vector<1x128xf32>
      %15 = arith.mulf %12, %12 : vector<8x128xf32>
      %cst_14 = arith.constant dense<0.000000e+00> : vector<128xf32>
      %16 = vector.multi_reduction <add>, %15, %cst_14 [0] : vector<8x128xf32> to vector<128xf32>
      %17 = vector.shape_cast %16 : vector<128xf32> to vector<1x128xf32>
      %cst_15 = arith.constant 1.250000e-01 : f32
      %18 = vector.broadcast %cst_15 : f32 to vector<1x128xf32>
      %19 = arith.mulf %14, %18 : vector<1x128xf32>
      %cst_16 = arith.constant 1.250000e-01 : f32
      %20 = vector.broadcast %cst_16 : f32 to vector<1x128xf32>
      %21 = arith.mulf %17, %20 : vector<1x128xf32>
      %22 = arith.mulf %19, %19 : vector<1x128xf32>
      %23 = arith.subf %21, %22 : vector<1x128xf32>
      %cst_17 = arith.constant 0.000000e+00 : f32
      %24 = vector.broadcast %cst_17 : f32 to vector<1x128xf32>
      %25 = arith.maximumf %23, %24 : vector<1x128xf32>
      %c0_18 = arith.constant 0 : index
      %c0_19 = arith.constant 0 : index
      %26 = vector.load %arg3[%c0_18, %c0_19] : memref<1x128xf32, #tpu.memory_space<vmem>>, vector<1x128xf32>
      %cst_20 = arith.constant 9.99999974E-6 : f32
      %27 = vector.broadcast %cst_20 : f32 to vector<1x128xf32>
      %28 = arith.addf %25, %27 : vector<1x128xf32>
      %29 = math.rsqrt %28 : vector<1x128xf32>
      %30 = arith.mulf %26, %29 : vector<1x128xf32>
      %c0_21 = arith.constant 0 : index
      %c0_22 = arith.constant 0 : index
      %31 = vector.load %arg4[%c0_21, %c0_22] : memref<1x128xf32, #tpu.memory_space<vmem>>, vector<1x128xf32>
      %32 = arith.mulf %19, %30 : vector<1x128xf32>
      %33 = arith.subf %31, %32 : vector<1x128xf32>
      %34 = vector.broadcast %30 : vector<1x128xf32> to vector<8x128xf32>
      %35 = arith.mulf %12, %34 : vector<8x128xf32>
      %36 = vector.broadcast %33 : vector<1x128xf32> to vector<8x128xf32>
      %37 = arith.addf %35, %36 : vector<8x128xf32>
      %cst_23 = arith.constant 0.000000e+00 : f32
      %38 = vector.broadcast %cst_23 : f32 to vector<8x128xf32>
      %39 = arith.maximumf %37, %38 : vector<8x128xf32>
      %40 = arith.truncf %39 : vector<8x128xf32> to vector<8x128xbf16>
      %c0_24 = arith.constant 0 : index
      %c0_25 = arith.constant 0 : index
      %41 = vector.load %arg5[%c0_24, %c0_25] : memref<128x128xbf16, #tpu.memory_space<vmem>>, vector<128x128xbf16>
      %cst_26 = arith.constant dense<0.000000e+00> : vector<8x128xf32>
      %42 = tpu.matmul %40, %41, %cst_26 {dimension_numbers = #tpu.dot_dimension_numbers<[1], [0], [0], [1], [0, 0, 1, 1], [], []>} : vector<8x128xbf16>, vector<128x128xbf16>, vector<8x128xf32> -> vector<8x128xf32>
      %cst_27 = arith.constant dense<0.000000e+00> : vector<128xf32>
      %43 = vector.multi_reduction <add>, %42, %cst_27 [0] : vector<8x128xf32> to vector<128xf32>
      %44 = vector.shape_cast %43 : vector<128xf32> to vector<1x128xf32>
      %45 = arith.mulf %42, %42 : vector<8x128xf32>
      %cst_28 = arith.constant dense<0.000000e+00> : vector<128xf32>
      %46 = vector.multi_reduction <add>, %45, %cst_28 [0] : vector<8x128xf32> to vector<128xf32>
      %47 = vector.shape_cast %46 : vector<128xf32> to vector<1x128xf32>
      %cst_29 = arith.constant 1.250000e-01 : f32
      %48 = vector.broadcast %cst_29 : f32 to vector<1x128xf32>
      %49 = arith.mulf %44, %48 : vector<1x128xf32>
      %cst_30 = arith.constant 1.250000e-01 : f32
      %50 = vector.broadcast %cst_30 : f32 to vector<1x128xf32>
      %51 = arith.mulf %47, %50 : vector<1x128xf32>
      %52 = arith.mulf %49, %49 : vector<1x128xf32>
      %53 = arith.subf %51, %52 : vector<1x128xf32>
      %cst_31 = arith.constant 0.000000e+00 : f32
      %54 = vector.broadcast %cst_31 : f32 to vector<1x128xf32>
      %55 = arith.maximumf %53, %54 : vector<1x128xf32>
      %c0_32 = arith.constant 0 : index
      %c0_33 = arith.constant 0 : index
      %56 = vector.load %arg6[%c0_32, %c0_33] : memref<1x128xf32, #tpu.memory_space<vmem>>, vector<1x128xf32>
      %cst_34 = arith.constant 9.99999974E-6 : f32
      %57 = vector.broadcast %cst_34 : f32 to vector<1x128xf32>
      %58 = arith.addf %55, %57 : vector<1x128xf32>
      %59 = math.rsqrt %58 : vector<1x128xf32>
      %60 = arith.mulf %56, %59 : vector<1x128xf32>
      %c0_35 = arith.constant 0 : index
      %c0_36 = arith.constant 0 : index
      %61 = vector.load %arg7[%c0_35, %c0_36] : memref<1x128xf32, #tpu.memory_space<vmem>>, vector<1x128xf32>
      %62 = arith.mulf %49, %60 : vector<1x128xf32>
      %63 = arith.subf %61, %62 : vector<1x128xf32>
      %64 = vector.broadcast %60 : vector<1x128xf32> to vector<8x128xf32>
      %65 = arith.mulf %42, %64 : vector<8x128xf32>
      %66 = vector.broadcast %63 : vector<1x128xf32> to vector<8x128xf32>
      %67 = arith.addf %65, %66 : vector<8x128xf32>
      %cst_37 = arith.constant 0.000000e+00 : f32
      %68 = vector.broadcast %cst_37 : f32 to vector<8x128xf32>
      %69 = arith.maximumf %67, %68 : vector<8x128xf32>
      %70 = arith.truncf %69 : vector<8x128xf32> to vector<8x128xbf16>
      %c0_38 = arith.constant 0 : index
      %c0_39 = arith.constant 0 : index
      %71 = vector.load %arg11[%c0_38, %c0_39] : memref<8x128xbf16, #tpu.memory_space<vmem>>, vector<8x128xbf16>
      tpu.vector_store %arg11[%c0_38, %c0_39], %70 {strides = array<i32>} : memref<8x128xbf16, #tpu.memory_space<vmem>>, vector<8x128xbf16>,
    } else {
    }
    %c0 = arith.constant 0 : index
    %c0_1 = arith.constant 0 : index
    %3 = vector.load %arg11[%c0, %c0_1] : memref<8x128xbf16, #tpu.memory_space<vmem>>, vector<8x128xbf16>
    %c0_2 = arith.constant 0 : index
    %c0_3 = arith.constant 0 : index
    %4 = vector.load %arg8[%c0_2, %c0_3] : memref<128x128xbf16, #tpu.memory_space<vmem>>, vector<128x128xbf16>
    %cst = arith.constant dense<0.000000e+00> : vector<8x128xf32>
    %5 = tpu.matmul %3, %4, %cst {dimension_numbers = #tpu.dot_dimension_numbers<[1], [0], [0], [1], [0, 0, 1, 1], [], []>} : vector<8x128xbf16>, vector<128x128xbf16>, vector<8x128xf32> -> vector<8x128xf32>
    %c0_4 = arith.constant 0 : index
    %c0_5 = arith.constant 0 : index
    %6 = vector.load %arg9[%c0_4, %c0_5] : memref<1x128xf32, #tpu.memory_space<vmem>>, vector<1x128xf32>
    %7 = vector.broadcast %6 : vector<1x128xf32> to vector<8x128xf32>
    %8 = arith.addf %5, %7 : vector<8x128xf32>
    %c0_6 = arith.constant 0 : index
    %c0_7 = arith.constant 0 : index
    %9 = vector.load %arg10[%c0_6, %c0_7] : memref<8x128xf32, #tpu.memory_space<vmem>>, vector<8x128xf32>
    tpu.vector_store %arg10[%c0_6, %c0_7], %8 {strides = array<i32>} : memref<8x128xf32, #tpu.memory_space<vmem>>, vector<8x128xf32>,
    return
  }
  func.func @transform_0(%arg0: i32) -> (i32, i32) {
    %c0_i32 = arith.constant 0 : i32
    %c0_i32_0 = arith.constant 0 : i32
    %c0_i32_1 = arith.constant 0 : i32
    return %c0_i32, %c0_i32_0 : i32, i32
  }
  func.func @transform_1(%arg0: i32) -> (i32, i32) {
    %c0_i32 = arith.constant 0 : i32
    %c0_i32_0 = arith.constant 0 : i32
    %c0_i32_1 = arith.constant 0 : i32
    return %c0_i32, %c0_i32_0 : i32, i32
  }
  func.func @transform_2(%arg0: i32) -> (i32, i32) {
    %c0_i32 = arith.constant 0 : i32
    %c0_i32_0 = arith.constant 0 : i32
    %c0_i32_1 = arith.constant 0 : i32
    return %c0_i32, %c0_i32_0 : i32, i32
  }
  func.func @transform_3(%arg0: i32) -> (i32, i32) {
    %c0_i32 = arith.constant 0 : i32
    %c0_i32_0 = arith.constant 0 : i32
    %c0_i32_1 = arith.constant 0 : i32
    return %c0_i32, %c0_i32_0 : i32, i32
  }
  func.func @transform_4(%arg0: i32) -> (i32, i32) {
    %c0_i32 = arith.constant 0 : i32
    %c0_i32_0 = arith.constant 0 : i32
    %c0_i32_1 = arith.constant 0 : i32
    return %c0_i32, %c0_i32_0 : i32, i32
  }
  func.func @transform_5(%arg0: i32) -> (i32, i32) {
    %c0_i32 = arith.constant 0 : i32
    %c0_i32_0 = arith.constant 0 : i32
    %c0_i32_1 = arith.constant 0 : i32
    return %c0_i32, %c0_i32_0 : i32, i32
  }
  func.func @transform_6(%arg0: i32) -> (i32, i32) {
    %c0_i32 = arith.constant 0 : i32
    %c0_i32_0 = arith.constant 0 : i32
    %c0_i32_1 = arith.constant 0 : i32
    return %c0_i32, %c0_i32_0 : i32, i32
  }
  func.func @transform_7(%arg0: i32) -> (i32, i32) {
    %c0_i32 = arith.constant 0 : i32
    %c0_i32_0 = arith.constant 0 : i32
    return %c0_i32, %arg0 : i32, i32
  }
  func.func @transform_8(%arg0: i32) -> (i32, i32) {
    %c0_i32 = arith.constant 0 : i32
    %c0_i32_0 = arith.constant 0 : i32
    return %c0_i32, %arg0 : i32, i32
  }
  func.func @transform_9(%arg0: i32) -> (i32, i32) {
    %c0_i32 = arith.constant 0 : i32
    %c0_i32_0 = arith.constant 0 : i32
    return %c0_i32, %arg0 : i32, i32
  }
}

</mosaic_0001>

<bundles_post_ra>
// kernel: tpu_custom_call.1
= control target key start
LH: loop header
LB: loop body
LE: loop exit
PB: predicated region body
PF: predicated region fallthrough
CT: control target
= control target key end

     0   :  { %14 = vsyncpa [#allocation4], 0  ;;  %s959_s0 = inlined_call_operand.hbm [shape: bf16[8,128], index: 0, kind: input, shape index: {}]   ;;  %s960_s1 = inlined_call_operand.hbm [shape: bf16[128,128], index: 1, kind: input, shape index: {}]   ;;  %s961_s2 = inlined_call_operand.vmem [shape: f32[1,128], index: 2, kind: input, shape index: {}]   ;;  %s962_s3 = inlined_call_operand.vmem [shape: f32[1,128], index: 3, kind: input, shape index: {}]   ;;  %s963_s4 = inlined_call_operand.hbm [shape: bf16[128,128], index: 4, kind: input, shape index: {}]   ;;  %s964_s5 = inlined_call_operand.vmem [shape: f32[1,128], index: 5, kind: input, shape index: {}]   ;;  %s965_s6 = inlined_call_operand.vmem [shape: f32[1,128], index: 6, kind: input, shape index: {}]   ;;  %s966_s7 = inlined_call_operand.hbm [shape: bf16[128,128], index: 7, kind: input, shape index: {}]   ;;  %s967_s8 = inlined_call_operand.vmem [shape: f32[1,128], index: 8, kind: input, shape index: {}]   ;;  %s968_s9 = inlined_call_operand.hbm [shape: f32[8,128], index: 9, kind: output, shape index: {}]  }
   0x1   :  { %15 = vsyncpa [#allocation7], 0 }
   0x2   :  { %16 = vsyncpa [#allocation10], 0 }
   0x3   :  { %17 = vsyncpa [#allocation5], 0  ;;  %s780_s30 = smov [#allocation6]   ;;  %s662_s13 = scalar_lea.hbm %s960_s1, 1024 }
   0x4   :  { %s33_s10 = sshll.u32 %s780_s30, 4  ;;  %p663_p0 = scmp.ne.s32.totalorder %s960_s1, %s662_s13  ;;  %s34_s10 = int_to_ptr.vmem [resolvable:$true] %s33_s10 }
   0x5   :  { %p666_p1 = scmp.lt.u32.totalorder %s662_s13, %s960_s1 }
   0x7   :  { %p668_p2 = pnand %p666_p1, %p663_p0 }
   0x9   :  { %671 = shalt.err (!%p668_p2)
}
   0xa   :  { %s672_s18 = scalar_lea.vmem %s34_s10, 1024  ;;  %p677_p4 = scmp.lt.s32.totalorder %s34_s10, %s34_s10 }
   0xb   :  { %p673_p3 = scmp.ne.s32.totalorder %s34_s10, %s672_s18  ;;  %p678_p5 = scmp.lt.s32.totalorder %s672_s18, %s672_s18 }
   0xd   :  { %p679_p6 = por %p678_p5, %p677_p4 }
   0xf   :  { %p680_p7 = pnand %p679_p6, %p673_p3 }
  0x11   :  { %683 = shalt.err (!%p680_p7)
}
  0x12   :  { %s781_s19 = smov 64   ;;  %s782_s20 = smov 4  }
  0x13   :  { %39 = dma.hbm_to_vmem [thread:$0]  %s960_s1, 1024, %s34_s10, [#allocation7], %s781_s19, %s781_s19, %s782_s20  }
  0x14   :  { %s783_s23 = smov [#allocation3]   ;;  %s784_s25 = smov [#allocation8]  }
  0x15   :  { %s24_s24 = sshll.u32 %s783_s23, 4  ;;  %s49_s26 = sshll.u32 %s784_s25, 4  ;;  %s25_s24 = int_to_ptr.vmem [resolvable:$true] %s24_s24  ;;  %s50_s26 = int_to_ptr.vmem [resolvable:$true] %s49_s26 }
  0x16   :  { %s684_s29 = scalar_lea.hbm %s959_s0, 64 }
  0x17   :  { %p685_p8 = scmp.ne.s32.totalorder %s959_s0, %s684_s29  ;;  %p688_p9 = scmp.lt.u32.totalorder %s684_s29, %s959_s0 }
  0x19   :  { %p690_p10 = pnand %p688_p9, %p685_p8 }
  0x1b   :  { %693 = shalt.err (!%p690_p10)
}
  0x1c   :  { %s694_s1 = scalar_lea.vmem %s25_s24, 64  ;;  %p699_p12 = scmp.lt.s32.totalorder %s25_s24, %s25_s24 }
  0x1d   :  { %p695_p11 = scmp.ne.s32.totalorder %s25_s24, %s694_s1  ;;  %p700_p13 = scmp.lt.s32.totalorder %s694_s1, %s694_s1 }
  0x1f   :  { %p701_p0 = por %p700_p13, %p699_p12 }
  0x21   :  { %p702_p1 = pnand %p701_p0, %p695_p11 }
  0x23   :  { %705 = shalt.err (!%p702_p1)
}
  0x24   :  { %27 = dma.hbm_to_vmem [thread:$0]  %s959_s0, 64, %s25_s24, [#allocation4]  }
  0x25   :  { %s706_s17 = scalar_lea.hbm %s963_s4, 1024 }
  0x26   :  { %p707_p2 = scmp.ne.s32.totalorder %s963_s4, %s706_s17  ;;  %p710_p3 = scmp.lt.u32.totalorder %s706_s17, %s963_s4 }
  0x28   :  { %p712_p4 = pnand %p710_p3, %p707_p2 }
  0x2a   :  { %715 = shalt.err (!%p712_p4)
}
  0x2b   :  { %s716_s25 = scalar_lea.vmem %s50_s26, 1024  ;;  %p721_p6 = scmp.lt.s32.totalorder %s50_s26, %s50_s26 }
  0x2c   :  { %p717_p5 = scmp.ne.s32.totalorder %s50_s26, %s716_s25  ;;  %p722_p7 = scmp.lt.s32.totalorder %s716_s25, %s716_s25 }
  0x2e   :  { %p723_p8 = por %p722_p7, %p721_p6 }
  0x30   :  { %p724_p9 = pnand %p723_p8, %p717_p5 }
  0x32   :  { %727 = shalt.err (!%p724_p9)
}
  0x33   :  { %55 = dma.hbm_to_vmem [thread:$0]  %s963_s4, 1024, %s50_s26, [#allocation7], %s781_s19, %s781_s19, %s782_s20  }
  0x34   :  { %s785_s27 = smov [#allocation9]   ;;  %s728_s11 = scalar_lea.hbm %s966_s7, 1024 }
  0x35   :  { %s65_s28 = sshll.u32 %s785_s27, 4  ;;  %p729_p10 = scmp.ne.s32.totalorder %s966_s7, %s728_s11  ;;  %s66_s28 = int_to_ptr.vmem [resolvable:$true] %s65_s28 }
  0x36   :  { %p732_p11 = scmp.lt.u32.totalorder %s728_s11, %s966_s7 }
  0x38   :  { %p734_p12 = pnand %p732_p11, %p729_p10 }
  0x3a   :  { %737 = shalt.err (!%p734_p12)
}
  0x3b   :  { %s738_s14 = scalar_lea.vmem %s66_s28, 1024  ;;  %p743_p0 = scmp.lt.s32.totalorder %s66_s28, %s66_s28 }
  0x3c   :  { %p739_p13 = scmp.ne.s32.totalorder %s66_s28, %s738_s14  ;;  %p744_p1 = scmp.lt.s32.totalorder %s738_s14, %s738_s14 }
  0x3e   :  { %p745_p2 = por %p744_p1, %p743_p0 }
  0x40   :  { %p746_p3 = pnand %p745_p2, %p739_p13 }
  0x42   :  { %749 = shalt.err (!%p746_p3)
}
  0x43   :  { %71 = dma.hbm_to_vmem [thread:$0]  %s966_s7, 1024, %s66_s28, [#allocation10], %s781_s19, %s781_s19, %s782_s20  }
  0x44   :  { %772 = dma.done.wait [#allocation4], 64  }
  0x45   :  { %773 = vsyncadd [#allocation4], 4294967232 }
  0x46   :  { %774 = dma.done.wait [#allocation7], 2048  }
  0x47   :  { %775 = vsyncadd [#allocation7], 4294965248 }
  0x48   :  { %776 = dma.done.wait [#allocation10], 1024  }
  0x49   :  { %777 = vsyncadd [#allocation10], 4294966272  ;;  %v786_v0 = vmov 0.0   ;;  %vm787_vm0 = vmmov 0   ;;  %v634_v1 = vld [vmem:[#allocation6] sm:$0xff]   ;;  %v635_v2 = vld [vmem:[#allocation6 + $0x8] sm:$0xff]   ;;  %v222_v41 = vlaneseq }
  0x4a   :  { %565 = vmatprep.subr.bf16.mxu0 %v786_v0  ;;  %581 = vmatprep.mubr.msk.bf16.mxu0 %vm787_vm0, %v786_v0  ;;  %v636_v3 = vld [vmem:[#allocation6 + $0x10] sm:$0xff]   ;;  %v637_v4 = vld [vmem:[#allocation6 + $0x18] sm:$0xff]   ;;  %v638_v5 = vld [vmem:[#allocation6 + $0x20] sm:$0xff]   ;;  %s788_s21 = smov [#allocation11]  }
  0x4b   :  { %585 = vmatprep.subr.bf16.mxu1 %v786_v0  ;;  %601 = vmatprep.mubr.msk.bf16.mxu1 %vm787_vm0, %v786_v0  ;;  %v639_v6 = vld [vmem:[#allocation6 + $0x28] sm:$0xff]   ;;  %v640_v7 = vld [vmem:[#allocation6 + $0x30] sm:$0xff]   ;;  %v641_v8 = vld [vmem:[#allocation6 + $0x38] sm:$0xff]   ;;  %v223_v42 = vshrl.u32 %v222_v41, 7  ;;  %s502_s22 = sshll.u32 %s788_s21, 4  ;;  %s503_s22 = int_to_ptr.vmem [resolvable:$true] %s502_s22 }
  0x4c   :  { %566 = vmatpush3.bf16.msra.mxu0 %v634_v1  ;;  %v91_v9 = vld [vmem:[#allocation3] sm:$0xf]  ;;  %v642_v10 = vld [vmem:[#allocation8] sm:$0xff]   ;;  %v643_v11 = vld [vmem:[#allocation8 + $0x8] sm:$0xff]   ;;  %p755_p5 = scmp.lt.s32.totalorder %s503_s22, %s503_s22 }
  0x4d   :  { %567 = vmatprep.subr.bf16.mxu0 %v786_v0  ;;  %586 = vmatpush3.bf16.msra.mxu1 %v642_v10  ;;  %v644_v12 = vld [vmem:[#allocation8 + $0x10] sm:$0xff]   ;;  %v645_v13 = vld [vmem:[#allocation8 + $0x18] sm:$0xff]   ;;  %v646_v14 = vld [vmem:[#allocation8 + $0x20] sm:$0xff]   ;;  %v922_v44 = vsub.s32 0, %v223_v42 }
  0x4e   :  { %587 = vmatprep.subr.bf16.mxu1 %v786_v0  ;;  %v647_v15 = vld [vmem:[#allocation8 + $0x28] sm:$0xff]   ;;  %v648_v16 = vld [vmem:[#allocation8 + $0x30] sm:$0xff]   ;;  %v649_v17 = vld [vmem:[#allocation8 + $0x38] sm:$0xff]  }
  0x4f   :  { %v214_v43 = vld [vmem:[%s961_s2] sm:$0x1]  ;;  %v650_v56 = vld [vmem:[#allocation9] sm:$0xff]   ;;  %v651_v57 = vld [vmem:[#allocation9 + $0x8] sm:$0xff]  }
  0x50   :  { %568 = vmatpush3.bf16.msra.mxu0 %v635_v2  ;;  %v218_v47 = vld [vmem:[%s962_s3] sm:$0x1]  ;;  %v652_v58 = vld [vmem:[#allocation9 + $0x10] sm:$0xff]   ;;  %v654_v60 = vld [vmem:[#allocation9 + $0x20] sm:$0xff]  }
  0x51   :  { %569 = vmatprep.subr.bf16.mxu0 %v786_v0  ;;  %588 = vmatpush3.bf16.msra.mxu1 %v643_v11  ;;  %v653_v59 = vld [vmem:[#allocation9 + $0x18] sm:$0xff]   ;;  %v655_v61 = vld [vmem:[#allocation9 + $0x28] sm:$0xff]   ;;  %v656_v62 = vld [vmem:[#allocation9 + $0x30] sm:$0xff]  }
  0x52   :  { %589 = vmatprep.subr.bf16.mxu1 %v786_v0  ;;  %v657_v63 = vld [vmem:[#allocation9 + $0x38] sm:$0xff]  }
  0x54   :  { %570 = vmatpush3.bf16.msra.mxu0 %v636_v3 }
  0x55   :  { %571 = vmatprep.subr.bf16.mxu0 %v786_v0  ;;  %590 = vmatpush3.bf16.msra.mxu1 %v644_v12 }
  0x56   :  { %591 = vmatprep.subr.bf16.mxu1 %v786_v0 }
  0x58   :  { %572 = vmatpush3.bf16.msra.mxu0 %v637_v4 }
  0x59   :  { %573 = vmatprep.subr.bf16.mxu0 %v786_v0  ;;  %592 = vmatpush3.bf16.msra.mxu1 %v645_v13 }
  0x5a   :  { %593 = vmatprep.subr.bf16.mxu1 %v786_v0 }
  0x5c   :  { %574 = vmatpush3.bf16.msra.mxu0 %v638_v5 }
  0x5d   :  { %575 = vmatprep.subr.bf16.mxu0 %v786_v0  ;;  %594 = vmatpush3.bf16.msra.mxu1 %v646_v14 }
  0x5e   :  { %595 = vmatprep.subr.bf16.mxu1 %v786_v0 }
  0x60   :  { %576 = vmatpush3.bf16.msra.mxu0 %v639_v6 }
  0x61   :  { %577 = vmatprep.subr.bf16.mxu0 %v786_v0  ;;  %596 = vmatpush3.bf16.msra.mxu1 %v647_v15 }
  0x62   :  { %597 = vmatprep.subr.bf16.mxu1 %v786_v0 }
  0x64   :  { %578 = vmatpush3.bf16.msra.mxu0 %v640_v7 }
  0x65   :  { %579 = vmatprep.subr.bf16.mxu0 %v786_v0  ;;  %598 = vmatpush3.bf16.msra.mxu1 %v648_v16 }
  0x66   :  { %599 = vmatprep.subr.bf16.mxu1 %v786_v0 }
  0x68   :  { %580 = vmatpush3.bf16.msra.mxu0 %v641_v8 }
  0x69   :  { %605 = vmatprep.subr.bf16.mxu0 %v786_v0  ;;  %600 = vmatpush3.bf16.msra.mxu1 %v649_v17 }
  0x6b   :  { %582 = vmatmul.mubr.bf16.vlgmr.msra.gmra.mrb[0].mxu0 %v91_v9 }
  0x6c   :  { %621 = vmatprep.mubr.msk.bf16.mxu0 %vm787_vm0, %v786_v0  ;;  %606 = vmatpush3.bf16.msra.mxu0 %v650_v56 }
  0x6d   :  { %607 = vmatprep.subr.bf16.mxu0 %v786_v0 }
  0x70   :  { %608 = vmatpush3.bf16.msra.mxu0 %v651_v57 }
  0x71   :  { %609 = vmatprep.subr.bf16.mxu0 %v786_v0 }
  0x74   :  { %610 = vmatpush3.bf16.msra.mxu0 %v652_v58 }
  0x75   :  { %611 = vmatprep.subr.bf16.mxu0 %v786_v0 }
  0x78   :  { %612 = vmatpush3.bf16.msra.mxu0 %v653_v59 }
  0x79   :  { %613 = vmatprep.subr.bf16.mxu0 %v786_v0 }
  0x7c   :  { %614 = vmatpush3.bf16.msra.mxu0 %v654_v60 }
  0x7d   :  { %615 = vmatprep.subr.bf16.mxu0 %v786_v0 }
  0x80   :  { %616 = vmatpush3.bf16.msra.mxu0 %v655_v61 }
  0x81   :  { %617 = vmatprep.subr.bf16.mxu0 %v786_v0 }
  0x84   :  { %618 = vmatpush3.bf16.msra.mxu0 %v656_v62 }
  0x85   :  { %619 = vmatprep.subr.bf16.mxu0 %v786_v0 }
  0x88   :  { %620 = vmatpush3.bf16.msra.mxu0 %v657_v63 }
 0x13e   :  { %v190_v18 = vpop.f32.mrb[0].mxu0 }
 0x13f   :  { %v196_v19 = vrot.slane %v190_v18, 4  ;;  %v202_v20 = vmul.f32 %v190_v18, %v190_v18  ;;  %v583_v21 = vpop.f32.mrb[1].mxu0 }
 0x140   :  { %v193_v22 = vpop.f32.mrb[2].mxu0 }
 0x141   :  { %v197_v23 = vadd.f32 %v196_v19, %v190_v18  ;;  %v203_v24 = vrot.slane %v202_v20, 4  ;;  %v584_v25 = vpop.f32.mrb[3].mxu0 }
 0x143   :  { %v198_v26 = vrot.slane %v197_v23, 2  ;;  %v204_v27 = vadd.f32 %v203_v24, %v202_v20 }
 0x145   :  { %v199_v28 = vadd.f32 %v198_v26, %v197_v23  ;;  %v205_v29 = vrot.slane %v204_v27, 2  ;;  %v359_v23 = vld [vmem:[%s964_s5] sm:$0x1] }
 0x146   :  { %v363_v26 = vld [vmem:[%s965_s6] sm:$0x1]  ;;  %s750_s6 = scalar_lea.vmem %s503_s22, 128 }
 0x147   :  { %v200_v30 = vrot.slane %v199_v28, 1  ;;  %v206_v31 = vadd.f32 %v205_v29, %v204_v27  ;;  %p751_p4 = scmp.ne.s32.totalorder %s503_s22, %s750_s6  ;;  %p756_p6 = scmp.lt.s32.totalorder %s750_s6, %s750_s6 }
 0x149   :  { %v201_v32 = vadd.f32 %v200_v30, %v199_v28  ;;  %v207_v33 = vrot.slane %v206_v31, 1  ;;  %p757_p7 = por %p756_p6, %p755_p5 }
 0x14b   :  { %v208_v34 = vadd.f32 %v207_v33, %v206_v31  ;;  %v209_v35 = vmul.f32 0.125, %v201_v32  ;;  %p758_p8 = pnand %p757_p7, %p751_p4 }
 0x14d   :  { %v210_v36 = vmul.f32 0.125, %v208_v34  ;;  %v211_v37 = vmul.f32 %v209_v35, %v209_v35 }
 0x14f   :  { %v212_v38 = vsub.f32 %v210_v36, %v211_v37  ;;  %v529_v36 = vld [vmem:[%s967_s8] ss:$0 sm:$0xff] }
 0x151   :  { %v213_v39 = vmax.f32 %v212_v38, 0.0 }
 0x153   :  { %v215_v40 = vadd.f32 1e-05, %v213_v39 }
 0x155   :  { %658 = vrsqrt.f32 %v215_v40 }
 0x15f   :  { %v659_v45 = vpop.eup %658 }
 0x160   :  { %v217_v46 = vmul.f32 %v659_v45, %v214_v43 }
 0x162   :  { %v225_v48 = vrot.slane %v217_v46, %v922_v44  ;;  %v219_v49 = vmul.f32 %v217_v46, %v209_v35 }
 0x164   :  { %v220_v50 = vsub.f32 %v218_v47, %v219_v49  ;;  %v227_v51 = vmul.f32 %v225_v48, %v190_v18 }
 0x166   :  { %v232_v52 = vrot.slane %v220_v50, %v922_v44 }
 0x168   :  { %v234_v53 = vadd.f32 %v232_v52, %v227_v51 }
 0x16a   :  { %v235_v54 = vmax.f32 %v234_v53, 0.0 }
 0x16c   :  { %v236_v55 = vpack.c.bf16 %v235_v54, %v235_v54 }
 0x16e   :  { %602 = vmatmul.mubr.bf16.vlgmr.msra.gmra.mrb[0].mxu1 %v236_v55 }
 0x241   :  { %v335_v1 = vpop.f32.mrb[0].mxu1 }
 0x242   :  { %v341_v2 = vrot.slane %v335_v1, 4  ;;  %v347_v3 = vmul.f32 %v335_v1, %v335_v1  ;;  %v603_v4 = vpop.f32.mrb[1].mxu1 }
 0x243   :  { %v338_v5 = vpop.f32.mrb[2].mxu1 }
 0x244   :  { %v342_v6 = vadd.f32 %v341_v2, %v335_v1  ;;  %v348_v7 = vrot.slane %v347_v3, 4  ;;  %v604_v8 = vpop.f32.mrb[3].mxu1 }
 0x246   :  { %v343_v9 = vrot.slane %v342_v6, 2  ;;  %v349_v10 = vadd.f32 %v348_v7, %v347_v3 }
 0x248   :  { %v344_v11 = vadd.f32 %v343_v9, %v342_v6  ;;  %v350_v12 = vrot.slane %v349_v10, 2 }
 0x24a   :  { %v345_v13 = vrot.slane %v344_v11, 1  ;;  %v351_v14 = vadd.f32 %v350_v12, %v349_v10 }
 0x24c   :  { %v346_v15 = vadd.f32 %v345_v13, %v344_v11  ;;  %v352_v16 = vrot.slane %v351_v14, 1 }
 0x24e   :  { %v353_v17 = vadd.f32 %v352_v16, %v351_v14  ;;  %v354_v18 = vmul.f32 0.125, %v346_v15 }
 0x250   :  { %v355_v0 = vmul.f32 0.125, %v353_v17  ;;  %v356_v19 = vmul.f32 %v354_v18, %v354_v18 }
 0x252   :  { %v357_v20 = vsub.f32 %v355_v0, %v356_v19 }
 0x254   :  { %v358_v21 = vmax.f32 %v357_v20, 0.0 }
 0x256   :  { %v360_v22 = vadd.f32 1e-05, %v358_v21 }
 0x258   :  { %660 = vrsqrt.f32 %v360_v22 }
 0x262   :  { %v661_v24 = vpop.eup %660 }
 0x263   :  { %v362_v25 = vmul.f32 %v661_v24, %v359_v23 }
 0x265   :  { %v364_v27 = vmul.f32 %v362_v25, %v354_v18  ;;  %v370_v28 = vrot.slane %v362_v25, %v922_v44 }
 0x267   :  { %v365_v29 = vsub.f32 %v363_v26, %v364_v27  ;;  %v372_v30 = vmul.f32 %v370_v28, %v335_v1 }
 0x269   :  { %v377_v31 = vrot.slane %v365_v29, %v922_v44 }
 0x26b   :  { %v379_v32 = vadd.f32 %v377_v31, %v372_v30 }
 0x26d   :  { %v380_v33 = vmax.f32 %v379_v32, 0.0 }
 0x26f   :  { %v381_v34 = vpack.c.bf16 %v380_v33, %v380_v33 }
 0x271   :  { %382 = vst [vmem:[#allocation2] sm:$0xf] %v381_v34 }
 0x278   :  { %v383_v35 = vld [vmem:[#allocation2] sm:$0xf] }
 0x279   :  { %622 = vmatmul.mubr.bf16.vlgmr.msra.gmra.mrb[4].mxu0 %v383_v35 }
 0x34c   :  { %v489_v37 = vpop.f32.mrb[4].mxu0 }
 0x34d   :  { %v490_v38 = vadd.f32 %v529_v36, %v489_v37  ;;  %v623_v39 = vpop.f32.mrb[5].mxu0 }
 0x34e   :  { %v492_v40 = vpop.f32.mrb[6].mxu0 }
 0x34f   :  { %495 = vst [vmem:[#allocation11] sm:$0xff] %v490_v38  ;;  %v624_v41 = vpop.f32.mrb[7].mxu0 }
 0x350   :  { %761 = shalt.err (!%p758_p8)
}
 0x351   :  { %s762_s8 = scalar_lea.hbm %s968_s9, 128 }
 0x352   :  { %p763_p9 = scmp.ne.s32.totalorder %s968_s9, %s762_s8  ;;  %p766_p10 = scmp.lt.u32.totalorder %s762_s8, %s968_s9 }
 0x354   :  { %p768_p11 = pnand %p766_p10, %p763_p9 }
 0x356   :  { %771 = shalt.err (!%p768_p11)
}
 0x357   :  { %505 = dma.vmem_to_hbm [thread:$0]  %s503_s22, 128, %s968_s9, [#allocation5]  }
 0x358   :  { %778 = dma.done.wait [#allocation5], 128  }
 0x359   :  { %779 = vsyncadd [#allocation5], 4294967168 }
 0x35a   :  { %509 = vsyncpa [#allocation4], 1 }
 0x35b   :  { %510 = vsyncpa [#allocation7], 1 }
 0x35c   :  { %511 = vsyncpa [#allocation10], 1 }
 0x35d   :  { %512 = vsyncpa [#allocation5], 1 }

</bundles_post_ra>
